<compile_context>
chip_gen: v7x
topology: tpu7x:2x2x1
jax: 0.10.0
libtpu: 0.0.40
codegen_flags: <defaults>
</compile_context>

<pallas_src>
import functools

import jax
import jax.numpy as jnp
from jax.experimental import pallas as pl
from jax.experimental.pallas import tpu as pltpu

KH = KW = 3  # assumed conv kernel size


def _round_up(x, m):
    return ((x + m - 1) // m) * m


def _fused_conv3x3_kernel(xa_ref, xb_ref, cid_ref, w_ref, b_ref, o_ref,
                          xcat_ref, p_ref, *, width, cin, tile):
    """One (batch, spatial-tile) step of the fused 3x3 conv.

    xa_ref  : (1, Cin, T)   flat vertically-padded image, lanes [j0, j0+T)
    xb_ref  : (1, Cin, T)   flat vertically-padded image, lanes [j0+T, j0+2T)
    cid_ref : (1, T) int32  output column index (j mod W) for this tile
    w_ref   : (Cout, 9*Cin) flattened weights, (kh*3 + kw)*Cin + cin ordering
    b_ref   : (Cout, 1)     bias
    o_ref   : (1, Cout, T)  output tile (NCHW-flattened, lane-dense)
    xcat_ref: (Cin, 2T)     VMEM scratch — stitched input window
    p_ref   : (9*Cin, T)    VMEM scratch — in-VMEM im2col patches
    """
    T = tile
    W = width

    # Stitch the two consecutive lane-blocks so every tap window [d, d+T)
    # (d in [W-1, 3W+1], T >= 3W+2) is a static slice of one buffer.
    xcat_ref[:, :T] = xa_ref[0]
    xcat_ref[:, T:] = xb_ref[0]

    col = cid_ref[...]             # (1, T)
    left = col == 0                # kw == 0 taps fall off the left image edge
    right = col == (W - 1)         # kw == 2 taps fall off the right image edge

    # Build the im2col patches in VMEM (no HBM-materialized patches tensor).
    for kh in range(KH):
        for kw in range(KW):
            d = (kh + 1) * W + (kw - 1)       # static lane offset of this tap
            v = xcat_ref[:, d:d + T]          # (Cin, T)
            if kw == 0:
                v = jnp.where(left, 0.0, v)
            elif kw == 2:
                v = jnp.where(right, 0.0, v)
            k0 = (kh * KW + kw) * cin
            p_ref[k0:k0 + cin, :] = v

    # Single K = 9*Cin MXU dot per tile (kept per review), f32 accumulation.
    acc = jnp.dot(w_ref[...], p_ref[...], preferred_element_type=jnp.float32)
    acc = acc + b_ref[...]
    o_ref[0] = acc.astype(o_ref.dtype)


def _pick_spatial_tile(HW, W, Cin, Cout, N, *, max_tile=16384,
                       vmem_budget_bytes=36 * 1024 * 1024):
    """Pick the lane tile T (flattened-spatial pixels per grid step).

    Constraints:
      * T % 128 == 0            (lane-dense blocks)
      * T >= 3*W + 2            (two consecutive blocks cover the 3x3 halo)
      * double-buffered blocks + scratch stay within the VMEM budget
    Prefers a T that divides HW exactly (no output padding / final slice).
    """
    t_min = _round_up(max(3 * W + 2, 128), 128)

    # f32 words per lane resident in VMEM: double-buffered xa/xb/col/out blocks
    # plus the xcat / patches scratch and the f32 accumulator (+astype copy).
    words_per_lane = (4 * Cin + 2) + 2 * Cout + 2 * Cin + 9 * Cin + 2 * Cout
    t_cap = (vmem_budget_bytes // (4 * words_per_lane)) // 128 * 128
    t_cap = max(t_min, min(max_tile, t_cap))

    tile = None
    if HW % 128 == 0:
        t = (min(t_cap, HW) // 128) * 128
        while t >= t_min:
            if HW % t == 0:
                tile = t
                break
            t -= 128
    if tile is None:
        # Ragged spatial size: pad H*W up to a multiple of the tile instead of
        # forcing a whole-image tile (keeps VMEM bounded for large odd images).
        tile = max(t_min, min(t_cap, _round_up(HW, 128)))

    # v7x has two TensorCores: avoid a single-step grid for single-image calls.
    if N == 1 and tile >= HW and HW % 128 == 0:
        t = ((HW // 2) // 128) * 128
        while t >= t_min:
            if HW % t == 0:
                tile = t
                break
            t -= 128
    return tile


def shallow_feature_forward(x_nchw, weight, bias, *, max_tile=16384):
    """3x3 / stride-1 / pad-1 conv with bias, NCHW in -> NCHW out.

    x_nchw: (N, Cin, H, W); weight: (Cout, Cin, 3, 3); bias: (Cout,).
    """
    N, Cin, H, W = x_nchw.shape
    Cout = weight.shape[0]
    HW = H * W
    K = KH * KW * Cin

    T = _pick_spatial_tile(HW, W, Cin, Cout, N, max_tile=max_tile)
    HWp = _round_up(HW, T)        # padded spatial extent (== HW in the common case)
    nt = HWp // T
    Li = HWp + T                  # flat input length: one extra block for the halo view

    # Flat, vertically-padded input: [2 zero rows][image rows][zero tail].
    # Tap (kh, kw) of output pixel j lives at flat index j + (kh+1)*W + kw - 1,
    # so every tap of an output tile is a static slice of two consecutive blocks.
    x_flat = x_nchw.reshape(N, Cin, HW)
    x_flat = jnp.pad(x_flat, ((0, 0), (0, 0), (2 * W, Li - HW - 2 * W)))

    # Output column index per flattened pixel — lets the kernel mask the
    # left/right image edges without an in-kernel iota/modulo.
    col_ids = (jnp.arange(HWp, dtype=jnp.int32) % W).reshape(1, HWp)

    # Weight (Cout, Cin, 3, 3) -> (Cout, 3, 3, Cin) -> (Cout, K): matches the
    # (kh*3 + kw)*Cin + cin patch-row ordering used in the kernel.
    w_flat = jnp.transpose(weight, (0, 2, 3, 1)).reshape(Cout, K)
    b_col = bias.reshape(Cout, 1)

    kernel = functools.partial(_fused_conv3x3_kernel, width=W, cin=Cin, tile=T)

    out_flat = pl.pallas_call(
        kernel,
        out_shape=jax.ShapeDtypeStruct((N, Cout, HWp), x_nchw.dtype),
        grid_spec=pltpu.PrefetchScalarGridSpec(
            num_scalar_prefetch=0,
            grid=(N, nt),
            in_specs=[
                pl.BlockSpec((1, Cin, T), lambda n, t: (n, 0, t)),      # block t
                pl.BlockSpec((1, Cin, T), lambda n, t: (n, 0, t + 1)),  # block t+1 (halo)
                pl.BlockSpec((1, T), lambda n, t: (0, t)),
                pl.BlockSpec((Cout, K), lambda n, t: (0, 0)),
                pl.BlockSpec((Cout, 1), lambda n, t: (0, 0)),
            ],
            out_specs=pl.BlockSpec((1, Cout, T), lambda n, t: (n, 0, t)),
            scratch_shapes=[
                pltpu.VMEM((Cin, 2 * T), x_nchw.dtype),   # stitched input window
                pltpu.VMEM((K, T), x_nchw.dtype),         # in-VMEM im2col patches
            ],
        ),
        compiler_params=pltpu.CompilerParams(
            dimension_semantics=("parallel", "parallel"),
            vmem_limit_bytes=48 * 1024 * 1024,
        ),
    )(x_flat, x_flat, col_ids, w_flat, b_col)

    if HWp != HW:
        out_flat = out_flat[:, :, :HW]    # ragged case only: drop the lane padding
    # Contiguous reshape only (no transpose): output is already NCHW-ordered.
    return out_flat.reshape(N, Cout, H, W)


def _reference_conv(x_nchw, weight, bias):
    # Plain-JAX reference (NCHW conv), for the correctness check.
    out = jax.lax.conv_general_dilated(
        x_nchw.astype(jnp.float32), weight.astype(jnp.float32),
        window_strides=(1, 1), padding=((1, 1), (1, 1)),
        dimension_numbers=("NCHW", "OIHW", "NCHW"))
    return out + bias.reshape(1, -1, 1, 1)


if __name__ == "__main__":
    key = jax.random.PRNGKey(0)
    k_x, k_w, k_b, k_x2 = jax.random.split(key, 4)

    # Primary case: module defaults (Cin=3, Cout=96), small aligned spatial size.
    N, Cin, H, W = 2, 3, 16, 16
    Cout = 96
    fan_in = Cin * KH * KW

    x = jax.random.normal(k_x, (N, Cin, H, W), dtype=jnp.float32)
    weight = jax.random.normal(k_w, (Cout, Cin, KH, KW), dtype=jnp.float32) / jnp.sqrt(fan_in)
    bias = jax.random.normal(k_b, (Cout,), dtype=jnp.float32) * 0.01

    out = jax.block_until_ready(shallow_feature_forward(x, weight, bias))
    ref = _reference_conv(x, weight, bias)
    assert out.shape == (N, Cout, H, W)
    assert jnp.allclose(out, ref, atol=1e-4, rtol=1e-4), "mismatch vs reference conv (aligned case)"

    # Ragged case: H*W not a multiple of 128 exercises the lane-padding path.
    N2, H2, W2, Cout2 = 1, 10, 10, 8
    x2 = jax.random.normal(k_x2, (N2, Cin, H2, W2), dtype=jnp.float32)
    w2 = jax.random.normal(k_w, (Cout2, Cin, KH, KW), dtype=jnp.float32) / jnp.sqrt(fan_in)
    b2 = jax.random.normal(k_b, (Cout2,), dtype=jnp.float32) * 0.01
    out2 = jax.block_until_ready(shallow_feature_forward(x2, w2, b2))
    ref2 = _reference_conv(x2, w2, b2)
    assert out2.shape == (N2, Cout2, H2, W2)
    assert jnp.allclose(out2, ref2, atol=1e-4, rtol=1e-4), "mismatch vs reference conv (ragged case)"

    print("KERNEL_OK")
</pallas_src>

<mosaic_0001>
module attributes {stable_mosaic.version = 11 : i64} {
  func.func @_fused_conv3x3_kernel(%arg0: i32, %arg1: i32, %arg2: memref<1x3x256xf32, #tpu.memory_space<vmem>>, %arg3: memref<1x3x256xf32, #tpu.memory_space<vmem>>, %arg4: memref<1x256xi32, #tpu.memory_space<vmem>>, %arg5: memref<96x27xf32, #tpu.memory_space<vmem>>, %arg6: memref<96x1xf32, #tpu.memory_space<vmem>>, %arg7: memref<1x96x256xf32, #tpu.memory_space<vmem>>, %arg8: memref<3x512xf32, #tpu.memory_space<vmem>>, %arg9: memref<27x256xf32, #tpu.memory_space<vmem>>) attributes {dimension_semantics = [#tpu.dimension_semantics<parallel>, #tpu.dimension_semantics<parallel>], iteration_bounds = array<i64: 2, 1>, scalar_prefetch = 0 : i64, scratch_operands = 2 : i64, tpu.core_type = #tpu.core_type<tc>, window_params = [{transform_indices = @transform_0, window_bounds = array<i64: 1, 3, 256>}, {transform_indices = @transform_1, window_bounds = array<i64: 1, 3, 256>}, {transform_indices = @transform_2, window_bounds = array<i64: 1, 256>}, {pipeline_mode = #tpu.pipeline_mode<synchronous>, transform_indices = @transform_3, window_bounds = array<i64: 96, 27>}, {pipeline_mode = #tpu.pipeline_mode<synchronous>, transform_indices = @transform_4, window_bounds = array<i64: 96, 1>}, {transform_indices = @transform_5, window_bounds = array<i64: 1, 96, 256>}]} {
    %c0 = arith.constant 0 : index
    %c0_0 = arith.constant 0 : index
    %c0_1 = arith.constant 0 : index
    %0 = vector.load %arg2[%c0, %c0_0, %c0_1] : memref<1x3x256xf32, #tpu.memory_space<vmem>>, vector<1x3x256xf32>
    %1 = vector.shape_cast %0 : vector<1x3x256xf32> to vector<3x256xf32>
    %c0_2 = arith.constant 0 : index
    %c0_3 = arith.constant 0 : index
    %2 = vector.load %arg8[%c0_2, %c0_3] : memref<3x512xf32, #tpu.memory_space<vmem>>, vector<3x256xf32>
    tpu.vector_store %arg8[%c0_2, %c0_3], %1 {strides = array<i32>} : memref<3x512xf32, #tpu.memory_space<vmem>>, vector<3x256xf32>,
    %c0_4 = arith.constant 0 : index
    %c0_5 = arith.constant 0 : index
    %c0_6 = arith.constant 0 : index
    %3 = vector.load %arg3[%c0_4, %c0_5, %c0_6] : memref<1x3x256xf32, #tpu.memory_space<vmem>>, vector<1x3x256xf32>
    %4 = vector.shape_cast %3 : vector<1x3x256xf32> to vector<3x256xf32>
    %c0_7 = arith.constant 0 : index
    %c256 = arith.constant 256 : index
    %5 = vector.load %arg8[%c0_7, %c256] : memref<3x512xf32, #tpu.memory_space<vmem>>, vector<3x256xf32>
    tpu.vector_store %arg8[%c0_7, %c256], %4 {strides = array<i32>} : memref<3x512xf32, #tpu.memory_space<vmem>>, vector<3x256xf32>,
    %c0_8 = arith.constant 0 : index
    %c0_9 = arith.constant 0 : index
    %6 = vector.load %arg4[%c0_8, %c0_9] : memref<1x256xi32, #tpu.memory_space<vmem>>, vector<1x256xi32>
    %c0_i32 = arith.constant 0 : i32
    %7 = vector.broadcast %c0_i32 : i32 to vector<1x256xi32>
    %8 = arith.cmpi eq, %6, %7 : vector<1x256xi32>
    %c15_i32 = arith.constant 15 : i32
    %9 = vector.broadcast %c15_i32 : i32 to vector<1x256xi32>
    %10 = arith.cmpi eq, %6, %9 : vector<1x256xi32>
    %c0_10 = arith.constant 0 : index
    %c15 = arith.constant 15 : index
    %11 = vector.load %arg8[%c0_10, %c15] : memref<3x512xf32, #tpu.memory_space<vmem>>, vector<3x256xf32>
    %cst = arith.constant 0.000000e+00 : f32
    %12 = vector.shape_cast %8 : vector<1x256xi1> to vector<1x256xi1>
    %13 = vector.broadcast %12 : vector<1x256xi1> to vector<3x256xi1>
    %14 = vector.broadcast %cst : f32 to vector<3x256xf32>
    %15 = arith.select %13, %14, %11 : vector<3x256xi1>, vector<3x256xf32>
    %c0_11 = arith.constant 0 : index
    %c0_12 = arith.constant 0 : index
    %16 = vector.load %arg9[%c0_11, %c0_12] : memref<27x256xf32, #tpu.memory_space<vmem>>, vector<3x256xf32>
    tpu.vector_store %arg9[%c0_11, %c0_12], %15 {strides = array<i32>} : memref<27x256xf32, #tpu.memory_space<vmem>>, vector<3x256xf32>,
    %c0_13 = arith.constant 0 : index
    %c16 = arith.constant 16 : index
    %17 = vector.load %arg8[%c0_13, %c16] : memref<3x512xf32, #tpu.memory_space<vmem>>, vector<3x256xf32>
    %c3 = arith.constant 3 : index
    %c0_14 = arith.constant 0 : index
    %18 = vector.load %arg9[%c3, %c0_14] : memref<27x256xf32, #tpu.memory_space<vmem>>, vector<3x256xf32>
    tpu.vector_store %arg9[%c3, %c0_14], %17 {strides = array<i32>} : memref<27x256xf32, #tpu.memory_space<vmem>>, vector<3x256xf32>,
    %c0_15 = arith.constant 0 : index
    %c17 = arith.constant 17 : index
    %19 = vector.load %arg8[%c0_15, %c17] : memref<3x512xf32, #tpu.memory_space<vmem>>, vector<3x256xf32>
    %cst_16 = arith.constant 0.000000e+00 : f32
    %20 = vector.shape_cast %10 : vector<1x256xi1> to vector<1x256xi1>
    %21 = vector.broadcast %20 : vector<1x256xi1> to vector<3x256xi1>
    %22 = vector.broadcast %cst_16 : f32 to vector<3x256xf32>
    %23 = arith.select %21, %22, %19 : vector<3x256xi1>, vector<3x256xf32>
    %c6 = arith.constant 6 : index
    %c0_17 = arith.constant 0 : index
    %24 = vector.load %arg9[%c6, %c0_17] : memref<27x256xf32, #tpu.memory_space<vmem>>, vector<3x256xf32>
    tpu.vector_store %arg9[%c6, %c0_17], %23 {strides = array<i32>} : memref<27x256xf32, #tpu.memory_space<vmem>>, vector<3x256xf32>,
    %c0_18 = arith.constant 0 : index
    %c31 = arith.constant 31 : index
    %25 = vector.load %arg8[%c0_18, %c31] : memref<3x512xf32, #tpu.memory_space<vmem>>, vector<3x256xf32>
    %cst_19 = arith.constant 0.000000e+00 : f32
    %26 = vector.shape_cast %8 : vector<1x256xi1> to vector<1x256xi1>
    %27 = vector.broadcast %26 : vector<1x256xi1> to vector<3x256xi1>
    %28 = vector.broadcast %cst_19 : f32 to vector<3x256xf32>
    %29 = arith.select %27, %28, %25 : vector<3x256xi1>, vector<3x256xf32>
    %c9 = arith.constant 9 : index
    %c0_20 = arith.constant 0 : index
    %30 = vector.load %arg9[%c9, %c0_20] : memref<27x256xf32, #tpu.memory_space<vmem>>, vector<3x256xf32>
    tpu.vector_store %arg9[%c9, %c0_20], %29 {strides = array<i32>} : memref<27x256xf32, #tpu.memory_space<vmem>>, vector<3x256xf32>,
    %c0_21 = arith.constant 0 : index
    %c32 = arith.constant 32 : index
    %31 = vector.load %arg8[%c0_21, %c32] : memref<3x512xf32, #tpu.memory_space<vmem>>, vector<3x256xf32>
    %c12 = arith.constant 12 : index
    %c0_22 = arith.constant 0 : index
    %32 = vector.load %arg9[%c12, %c0_22] : memref<27x256xf32, #tpu.memory_space<vmem>>, vector<3x256xf32>
    tpu.vector_store %arg9[%c12, %c0_22], %31 {strides = array<i32>} : memref<27x256xf32, #tpu.memory_space<vmem>>, vector<3x256xf32>,
    %c0_23 = arith.constant 0 : index
    %c33 = arith.constant 33 : index
    %33 = vector.load %arg8[%c0_23, %c33] : memref<3x512xf32, #tpu.memory_space<vmem>>, vector<3x256xf32>
    %cst_24 = arith.constant 0.000000e+00 : f32
    %34 = vector.shape_cast %10 : vector<1x256xi1> to vector<1x256xi1>
    %35 = vector.broadcast %34 : vector<1x256xi1> to vector<3x256xi1>
    %36 = vector.broadcast %cst_24 : f32 to vector<3x256xf32>
    %37 = arith.select %35, %36, %33 : vector<3x256xi1>, vector<3x256xf32>
    %c15_25 = arith.constant 15 : index
    %c0_26 = arith.constant 0 : index
    %38 = vector.load %arg9[%c15_25, %c0_26] : memref<27x256xf32, #tpu.memory_space<vmem>>, vector<3x256xf32>
    tpu.vector_store %arg9[%c15_25, %c0_26], %37 {strides = array<i32>} : memref<27x256xf32, #tpu.memory_space<vmem>>, vector<3x256xf32>,
    %c0_27 = arith.constant 0 : index
    %c47 = arith.constant 47 : index
    %39 = vector.load %arg8[%c0_27, %c47] : memref<3x512xf32, #tpu.memory_space<vmem>>, vector<3x256xf32>
    %cst_28 = arith.constant 0.000000e+00 : f32
    %40 = vector.shape_cast %8 : vector<1x256xi1> to vector<1x256xi1>
    %41 = vector.broadcast %40 : vector<1x256xi1> to vector<3x256xi1>
    %42 = vector.broadcast %cst_28 : f32 to vector<3x256xf32>
    %43 = arith.select %41, %42, %39 : vector<3x256xi1>, vector<3x256xf32>
    %c18 = arith.constant 18 : index
    %c0_29 = arith.constant 0 : index
    %44 = vector.load %arg9[%c18, %c0_29] : memref<27x256xf32, #tpu.memory_space<vmem>>, vector<3x256xf32>
    tpu.vector_store %arg9[%c18, %c0_29], %43 {strides = array<i32>} : memref<27x256xf32, #tpu.memory_space<vmem>>, vector<3x256xf32>,
    %c0_30 = arith.constant 0 : index
    %c48 = arith.constant 48 : index
    %45 = vector.load %arg8[%c0_30, %c48] : memref<3x512xf32, #tpu.memory_space<vmem>>, vector<3x256xf32>
    %c21 = arith.constant 21 : index
    %c0_31 = arith.constant 0 : index
    %46 = vector.load %arg9[%c21, %c0_31] : memref<27x256xf32, #tpu.memory_space<vmem>>, vector<3x256xf32>
    tpu.vector_store %arg9[%c21, %c0_31], %45 {strides = array<i32>} : memref<27x256xf32, #tpu.memory_space<vmem>>, vector<3x256xf32>,
    %c0_32 = arith.constant 0 : index
    %c49 = arith.constant 49 : index
    %47 = vector.load %arg8[%c0_32, %c49] : memref<3x512xf32, #tpu.memory_space<vmem>>, vector<3x256xf32>
    %cst_33 = arith.constant 0.000000e+00 : f32
    %48 = vector.shape_cast %10 : vector<1x256xi1> to vector<1x256xi1>
    %49 = vector.broadcast %48 : vector<1x256xi1> to vector<3x256xi1>
    %50 = vector.broadcast %cst_33 : f32 to vector<3x256xf32>
    %51 = arith.select %49, %50, %47 : vector<3x256xi1>, vector<3x256xf32>
    %c24 = arith.constant 24 : index
    %c0_34 = arith.constant 0 : index
    %52 = vector.load %arg9[%c24, %c0_34] : memref<27x256xf32, #tpu.memory_space<vmem>>, vector<3x256xf32>
    tpu.vector_store %arg9[%c24, %c0_34], %51 {strides = array<i32>} : memref<27x256xf32, #tpu.memory_space<vmem>>, vector<3x256xf32>,
    %c0_35 = arith.constant 0 : index
    %c0_36 = arith.constant 0 : index
    %53 = vector.load %arg5[%c0_35, %c0_36] : memref<96x27xf32, #tpu.memory_space<vmem>>, vector<96x27xf32>
    %c0_37 = arith.constant 0 : index
    %c0_38 = arith.constant 0 : index
    %54 = vector.load %arg9[%c0_37, %c0_38] : memref<27x256xf32, #tpu.memory_space<vmem>>, vector<27x256xf32>
    %cst_39 = arith.constant dense<0.000000e+00> : vector<96x256xf32>
    %55 = tpu.matmul %53, %54, %cst_39 {dimension_numbers = #tpu.dot_dimension_numbers<[1], [0], [0], [1], [0, 0, 1, 1], [], []>} : vector<96x27xf32>, vector<27x256xf32>, vector<96x256xf32> -> vector<96x256xf32>
    %c0_40 = arith.constant 0 : index
    %c0_41 = arith.constant 0 : index
    %56 = vector.load %arg6[%c0_40, %c0_41] : memref<96x1xf32, #tpu.memory_space<vmem>>, vector<96x1xf32>
    %57 = vector.broadcast %56 : vector<96x1xf32> to vector<96x256xf32>
    %58 = arith.addf %55, %57 : vector<96x256xf32>
    %c0_42 = arith.constant 0 : index
    %c0_43 = arith.constant 0 : index
    %c0_44 = arith.constant 0 : index
    %59 = vector.load %arg7[%c0_42, %c0_43, %c0_44] : memref<1x96x256xf32, #tpu.memory_space<vmem>>, vector<1x96x256xf32>
    %60 = vector.shape_cast %59 : vector<1x96x256xf32> to vector<96x256xf32>
    %61 = vector.shape_cast %58 : vector<96x256xf32> to vector<1x96x256xf32>
    tpu.vector_store %arg7[%c0_42, %c0_43, %c0_44], %61 {strides = array<i32>} : memref<1x96x256xf32, #tpu.memory_space<vmem>>, vector<1x96x256xf32>,
    return
  }
  func.func @transform_0(%arg0: i32, %arg1: i32) -> (i32, i32, i32) {
    %c0_i32 = arith.constant 0 : i32
    %c0_i32_0 = arith.constant 0 : i32
    return %arg0, %c0_i32, %arg1 : i32, i32, i32
  }
  func.func @transform_1(%arg0: i32, %arg1: i32) -> (i32, i32, i32) {
    %c1_i32 = arith.constant 1 : i32
    %0 = arith.addi %arg1, %c1_i32 : i32
    %c0_i32 = arith.constant 0 : i32
    %c0_i32_0 = arith.constant 0 : i32
    return %arg0, %c0_i32, %0 : i32, i32, i32
  }
  func.func @transform_2(%arg0: i32, %arg1: i32) -> (i32, i32) {
    %c0_i32 = arith.constant 0 : i32
    %c0_i32_0 = arith.constant 0 : i32
    return %c0_i32, %arg1 : i32, i32
  }
  func.func @transform_3(%arg0: i32, %arg1: i32) -> (i32, i32) {
    %c0_i32 = arith.constant 0 : i32
    %c0_i32_0 = arith.constant 0 : i32
    %c0_i32_1 = arith.constant 0 : i32
    return %c0_i32, %c0_i32_0 : i32, i32
  }
  func.func @transform_4(%arg0: i32, %arg1: i32) -> (i32, i32) {
    %c0_i32 = arith.constant 0 : i32
    %c0_i32_0 = arith.constant 0 : i32
    %c0_i32_1 = arith.constant 0 : i32
    return %c0_i32, %c0_i32_0 : i32, i32
  }
  func.func @transform_5(%arg0: i32, %arg1: i32) -> (i32, i32, i32) {
    %c0_i32 = arith.constant 0 : i32
    %c0_i32_0 = arith.constant 0 : i32
    return %arg0, %c0_i32, %arg1 : i32, i32, i32
  }
}

</mosaic_0001>

<bundles_post_ra>
// kernel: tpu_custom_call.1
= control target key start
LH: loop header
LB: loop body
LE: loop exit
PB: predicated region body
PF: predicated region fallthrough
CT: control target
= control target key end

     0   :  { %10 = vsyncpa [#allocation5], 0  ;;  %s1527_s0 = inlined_call_operand.vmem [shape: f32[2,3,512], index: 0, kind: input, shape index: {}]   ;;  %s1528_s1 = inlined_call_operand.vmem [shape: f32[2,3,512], index: 1, kind: input, shape index: {}]   ;;  %s1529_s2 = inlined_call_operand.vmem [shape: s32[1,256], index: 2, kind: input, shape index: {}]   ;;  %s1530_s3 = inlined_call_operand.vmem [shape: f32[96,27], index: 3, kind: input, shape index: {}]   ;;  %s1531_s4 = inlined_call_operand.vmem [shape: f32[96,1], index: 4, kind: input, shape index: {}]   ;;  %s1532_s5 = inlined_call_operand.hbm [shape: f32[2,96,256], index: 5, kind: output, shape index: {}]  }
   0x1   :  { %12 = vsyncpa [#allocation5 + $0x1], 0  ;;  %s1229_s18 = smov 0   ;;  %s1231_s19 = smov 0  }
   0x2   :  { %s1233_s20 = smov 0   ;;  %s1235_s21 = smov 0  }
   0x3   :  { %s1237_s22 = smov 0   ;;  %s1239_s23 = smov 0  }
   0x4 LB: > { %s976_s24 = sadd.s32 4294967295, %s1182_s23   ;;  %s977_s25 = sadd.s32 4294967294, %s1182_s23   ;;  %s1182_s23 = sphi %s1239_s23, %s18_s23   ;;  %s1178_s22 = sphi %s1237_s22, %s1539_s22   ;;  %s1174_s21 = sphi %s1235_s21, %s1538_s21   ;;  %s1170_s20 = sphi %s1233_s20, %s1537_s20   ;;  %s1166_s19 = sphi %s1231_s19, %s1536_s19   ;;  %s1162_s18 = sphi %s1229_s18, %s1535_s18  }
   0x5   : > { %s30_s26 = sadd.s32 1, %s1178_s22  ;;  %s165_s27 = sadd.s32 1, %s1170_s20 }
   0x6   : > { %p32_p0 = scmp.ge.s32.totalorder %s30_s26, 2  ;;  %p175_p1 = scmp.ne.s32.totalorder %s1170_s20, %s1166_s19 }
   0x7   : > { %p176_p2 = scmp.eq.s32.totalorder %s976_s24, 1  ;;  %p181_p3 = scmp.ne.s32.totalorder %s1166_s19, %s1162_s18 }
   0x8   : > { %s1541_s26 = smov (%p32_p0, %s30_s26), 0  ;;  %p182_p5 = scmp.eq.s32.totalorder %s977_s25, 1 }
   0x9   : > { %p1269_p4 = por %p176_p2, %p175_p1  ;;  %s160_s29 = ssub.s32 %s1178_s22, %s1541_s26 }
   0xa   : > { %p981_p6 = scmp.ge.s32.totalorder %s1182_s23, 1  ;;  %p163_p7 = scmp.eq.s32.totalorder %s160_s29, 0 }
   0xb   : > { %p1276_p8 = por %p182_p5, %p181_p3  ;;  %p242_p9 = scmp.lt.s32.totalorder %s1182_s23, 3 }
   0xc   : > { %s1282_s6 = scalar_select %p163_p7, %s1170_s20, %s165_s27  }
   0xd   : > { %p243_p10 = pnand %p981_p6, %p242_p9 }
   0xe   : > { %p289_p11 = scmp.lt.s32.totalorder (!%p243_p10), %s1174_s21, 1  ;;  %v1184_v2 = vmov (!%p243_p10), 0   ;;  %s1185_s16 = smov (!%p243_p10), 97   ;;  %v1194_v36 = vmov (!%p243_p10), 0.0   ;;  %v574_v37 = vld [vmem:[%s1531_s4] sm:$0xff] (!%p243_p10)  ;;  %v575_v38 = vld [vmem:[%s1531_s4 + $0x8] sm:$0xff] (!%p243_p10)  ;;  %v326_v49 = vlaneseq (!%p243_p10) }
   0xf   : > { %246 = sbr.rel (%p243_p10) target bundleno = 467 (0x1d3), region = 40  ;;  %1092 = vset.pattern.permute.xlu1 (!%p243_p10), %v1184_v2  ;;  %1093 = vset.pattern.permute.xlu0 (!%p243_p10), %v1184_v2  ;;  %s1186_s17 = smov (!%p243_p10), 111   ;;  %v576_v39 = vld [vmem:[%s1531_s4 + $0x10] sm:$0xff] (!%p243_p10)  ;;  %v578_v40 = vld [vmem:[%s1531_s4 + $0x20] sm:$0xff] (!%p243_p10)  ;;  %v577_v41 = vld [vmem:[%s1531_s4 + $0x18] sm:$0xff] (!%p243_p10)  ;;  %vm425_vm2 = vcmask (!%p243_p10), 793600  }
  0x10   : > { %s1187_s24 = smov (!%p243_p10), 95   ;;  %s1188_s25 = smov (!%p243_p10), 113   ;;  %754 = vmatprep.mubr.f32.mxu0 (!%p243_p10), %v1194_v36  ;;  %790 = vmatprep.mubr.f32.mxu1 (!%p243_p10), %v1194_v36  ;;  %v580_v42 = vld [vmem:[%s1531_s4 + $0x30] sm:$0xff] (!%p243_p10)  ;;  %v579_v43 = vld [vmem:[%s1531_s4 + $0x28] sm:$0xff] (!%p243_p10)  ;;  %v582_v44 = vld [vmem:[%s1531_s4 + $0x40] sm:$0xff] (!%p243_p10)  ;;  %v327_v51 = vshrl.u32 (!%p243_p10), %v326_v49, 7 }
  0x11   : > { %s1189_s27 = smov (!%p243_p10), 112   ;;  %s1190_s29 = smov (!%p243_p10), 96   ;;  %v581_v45 = vld [vmem:[%s1531_s4 + $0x38] sm:$0xff] (!%p243_p10)  ;;  %v584_v46 = vld [vmem:[%s1531_s4 + $0x50] sm:$0xff] (!%p243_p10)  ;;  %v583_v47 = vld [vmem:[%s1531_s4 + $0x48] sm:$0xff] (!%p243_p10)  ;;  %vm397_vm3 = vcmask (!%p243_p10), 908288  }
  0x12   : > { %s1193_s9 = smov (!%p243_p10), 80   ;;  %v585_v48 = vld [vmem:[%s1531_s4 + $0x58] sm:$0xff] (!%p243_p10)  ;;  %v320_v50 = vld [vmem:[%s1529_s2] sm:$0x3] (!%p243_p10)  ;;  %v328_v54 = vsub.s32 (!%p243_p10), 0, %v327_v51  ;;  %v332_v55 = vsub.s32 (!%p243_p10), 1, %v327_v51 }
  0x13   : > { %vm321_vm0 = vcmp.eq.s32.totalorder (!%p243_p10), %v320_v50, 0  ;;  %vm322_vm1 = vcmp.eq.s32.totalorder (!%p243_p10), %v320_v50, 15  ;;  %vm470_vm8 = vcmask (!%p243_p10), 777216   ;;  %vm345_vm9 = vcmask (!%p243_p10), 924672  }
  0x14   : > { %v325_v58 = vsel (!%p243_p10), %vm321_vm0, 1, %v1184_v2  ;;  %v377_v59 = vsel (!%p243_p10), %vm322_vm1, 1, %v1184_v2  ;;  %vm368_vm10 = vcmask (!%p243_p10), 916480   ;;  %vm452_vm11 = vcmask (!%p243_p10), 785408  }
  0x15   : > { %v1337_v60 = vrot.slane (!%p243_p10), %v325_v58, %v328_v54  ;;  %v1339_v61 = vrot.slane (!%p243_p10), %v325_v58, %v332_v55  ;;  %v1341_v62 = vrot.slane (!%p243_p10), %v377_v59, %v328_v54  ;;  %v1343_v63 = vrot.slane (!%p243_p10), %v377_v59, %v332_v55 }
  0x16   : > { %s290_s7 = scalar_select %p289_p11, %s1174_s21, 1  ;;  %vm498_vm12 = vcmask 662528   ;;  %vm545_vm13 = vcmask 646144   ;;  %vm527_vm14 = vcmask 654336   ;;  %vm683_vm15 = vcmask 1042432  }
  0x17   : > { %vm334_vm4 = vcmp.eq.s32.totalorder %v1337_v60, 1  ;;  %vm335_vm5 = vcmp.eq.s32.totalorder %v1339_v61, 1  ;;  %vm386_vm6 = vcmp.eq.s32.totalorder %v1341_v62, 1  ;;  %vm387_vm7 = vcmp.eq.s32.totalorder %v1343_v63, 1  ;;  %v554_v62 = vld [vmem:[%s1530_s3] sm:$0xff] }
  0x18   : > { %s1003_s8 = sshll.u32 %s290_s7, 4  ;;  %s1191_s7 = smov 81   ;;  %vm1195_vm0 = vmmov 1  }
  0x19   : > { %s296_s11 = scalar_lea.vmem %s1527_s0, %s1003_s8  ;;  %s1005_s12 = sadd.s32 8, %s1003_s8  ;;  %vm1012_vm1 = vmpackc.low %vm683_vm15, %vm1195_vm0 }
  0x1a   : > { %v316_v0 = vld [vmem:[%s296_s11] sm:$0x77]  ;;  %s307_s15 = scalar_lea.vmem %s1528_s1, %s1005_s12  ;;  %s1192_s8 = smov 79  }
  0x1b   : > { %317 = vst [vmem:[#allocation2] sm:$0x77] %v316_v0  ;;  %v318_v1 = vld [vmem:[%s307_s15] sm:$0x77]  ;;  %s285_s15 = sand.u32 1, %s1166_s19  }
  0x1c   : > { %319 = vst [vmem:[#allocation2 + $0x8] sm:$0x77] %v318_v1 }
  0x22   : > { %v414_v3 = vld [vmem:[#allocation2] sm:$0x77] }
  0x23   : > { %v375_v4 = vld [vmem:[#allocation2] sm:$0x77]  ;;  %419 = vrot.lane.b32.xlu1 %v414_v3, %s1185_s16  ;;  %v415_v5 = vld [vmem:[#allocation2 + $0x8] sm:$0x7]  ;;  %v418_v9 = vcombine.high %v414_v3, %v414_v3 }
  0x24   : > { %391 = vrot.lane.b32.xlu0 %v375_v4, %s1186_s17  ;;  %v459_v6 = vld [vmem:[#allocation2] sm:$0x77]  ;;  %v460_v7 = vld [vmem:[#allocation2 + $0x8] sm:$0x7]  ;;  %v390_v10 = vcombine.high %v375_v4, %v375_v4 }
  0x25   : > { %v376_v8 = vld [vmem:[#allocation2 + $0x8] sm:$0x7]  ;;  %v323_v11 = vld [vmem:[#allocation2] sm:$0x77]  ;;  %v463_v12 = vcombine.high %v459_v6, %v459_v6 }
  0x26   : > { %v338_v13 = vcombine.high %v323_v11, %v323_v11  ;;  %v354_v14 = vld [vmem:[#allocation2] sm:$0x77]  ;;  %v324_v16 = vld [vmem:[#allocation2 + $0x8] sm:$0x7] }
  0x27   : > { %423 = vrot.lane.b32.xlu1 %v415_v5, %s1185_s16  ;;  %v358_v15 = vcombine.high %v354_v14, %v354_v14  ;;  %v355_v17 = vld [vmem:[#allocation2 + $0x8] sm:$0x7]  ;;  %v440_v21 = vld [vmem:[#allocation2] sm:$0x77]  ;;  %v359_v23 = vrot.slane %v354_v14, 5 }
  0x28   : > { %464 = vrot.lane.b32.xlu0 %v459_v6, %s1187_s24  ;;  %v361_v19 = vrot.slane %v355_v17, 5  ;;  %v1100_v20 = vld [vmem:[#allocation2 + $0x8] ss:$0 sps:$4 sm:$0x77]   ;;  %v444_v22 = vcombine.low %v440_v21, %v440_v21  ;;  %v487_v24 = vld [vmem:[#allocation2] sm:$0x77] }
  0x29   : > { %v360_v18 = vrot.slane %v358_v15, 5  ;;  %v491_v25 = vcombine.high %v487_v24, %v487_v24  ;;  %v488_v26 = vld [vmem:[#allocation2 + $0x8] sm:$0x7]  ;;  %v534_v27 = vld [vmem:[#allocation2] sm:$0x77] }
  0x2a   : > { %v513_v28 = vld [vmem:[#allocation2] sm:$0x77]  ;;  %v538_v29 = vcombine.high %v534_v27, %v534_v27  ;;  %v535_v32 = vld [vmem:[#allocation2 + $0x8] sm:$0x7] }
  0x2b   : > { %468 = vrot.lane.b32.xlu1 %v460_v7, %s1187_s24  ;;  %v517_v30 = vcombine.high %v513_v28, %v513_v28  ;;  %v514_v33 = vld [vmem:[#allocation2 + $0x8] sm:$0x7]  ;;  %v518_v35 = vrot.slane %v513_v28, 3 }
  0x2c   : > { %395 = vrot.lane.b32.xlu0 %v376_v8, %s1186_s17  ;;  %v520_v34 = vrot.slane %v514_v33, 3 }
  0x2d   : > { %v519_v31 = vrot.slane %v517_v30, 3 }
  0x2f   : > { %421 = vrot.lane.b32.xlu1 %v418_v9, %s1185_s16  ;;  %s1021_s16 = smul.u32 192, %s285_s15 }
  0x30   : > { %393 = vrot.lane.b32.xlu0 %v390_v10, %s1186_s17 }
  0x31   : > { %s1440_s17 = scalar_lea.vmem [#allocation4], %s1021_s16 }
  0x33   : > { %341 = vrot.lane.b32.xlu1 %v338_v13, %s1188_s25 }
  0x34   : > { %466 = vrot.lane.b32.xlu0 %v463_v12, %s1187_s24  ;;  %s1022_s24 = smul.u32 3072, %s1174_s21 }
  0x37   : > { %339 = vrot.lane.b32.xlu1 %v323_v11, %s1188_s25 }
  0x38   : > { %343 = vrot.lane.b32.xlu0 %v324_v16, %s1188_s25  ;;  %s867_s25 = sshll.u32 %s1440_s17, 4  ;;  %s1472_s25 = int_to_ptr.vmem [resolvable:$true] %s867_s25 }
  0x3b   : > { %366 = vrot.lane.b32.xlu1 %v361_v19, %s1189_s27 }
  0x3c   : > { %364 = vrot.lane.b32.xlu0 %v360_v18, %s1189_s27 }
  0x3f   : > { %450 = vrot.lane.b32.xlu1 %v1100_v20, %s1190_s29 }
  0x40   : > { %448 = vrot.lane.b32.xlu0 %v440_v21, %s1190_s29 }
  0x43   : > { %446 = vrot.lane.b32.xlu1 %v444_v22, %s1190_s29  ;;  %s1470_s29 = scalar_lea.hbm %s1532_s5, %s1022_s24 }
  0x44   : > { %362 = vrot.lane.b32.xlu0 %v359_v23, %s1189_s27 }
  0x47   : > { %496 = vrot.lane.b32.xlu1 %v488_v26, %s1191_s7 }
  0x48   : > { %494 = vrot.lane.b32.xlu0 %v491_v25, %s1191_s7 }
  0x4b   : > { %541 = vrot.lane.b32.xlu1 %v538_v29, %s1192_s8 }
  0x4c   : > { %492 = vrot.lane.b32.xlu0 %v487_v24, %s1191_s7  ;;  %s1481_s7 = scalar_lea.sflag [#allocation5], %s285_s15 }
  0x4f   : > { %523 = vrot.lane.b32.xlu1 %v519_v31, %s1193_s9 }
  0x50   : > { %543 = vrot.lane.b32.xlu0 %v535_v32, %s1192_s8 }
  0x53   : > { %539 = vrot.lane.b32.xlu1 %v534_v27, %s1192_s8  ;;  %s1104_s8 = scalar_lea.vmem %s1472_s25, 3072 }
  0x54   : > { %525 = vrot.lane.b32.xlu0 %v520_v34, %s1193_s9  ;;  %p1105_p12 = scmp.ne.s32.totalorder %s1472_s25, %s1104_s8 }
  0x56   : > { %p1106_p13 = pnand %p1105_p12, %p1269_p4 }
  0x57   : > { %588 = vperm.xlu1 %1092, %v574_v37  }
  0x58   : > { %521 = vrot.lane.b32.xlu0 %v518_v35, %s1193_s9  ;;  %p1107_p0 = pneg %p1106_p13  ;;  %s1196_s9 = smov [#allocation4]  }
  0x59   : > { %s1108_s10 = sshll.u32 %s1196_s9, 4  ;;  %s1109_s10 = int_to_ptr.vmem [resolvable:$false] %s1108_s10 }
  0x5a   : > { %s1110_s11 = scalar_lea.vmem %s1109_s10, 6144  ;;  %p1111_p1 = scmp.lt.s32.totalorder %s1472_s25, %s1109_s10 }
  0x5b   : > { %598 = vperm.xlu1 %1092, %v576_v39   ;;  %p1112_p2 = scmp.lt.s32.totalorder %s1110_s11, %s1104_s8 }
  0x5c   : > { %593 = vperm.xlu0 %1093, %v575_v38  }
  0x5d   : > { %p1113_p3 = por %p1112_p2, %p1111_p1 }
  0x5f   : > { %603 = vperm.xlu1 %1092, %v577_v41   ;;  %p1114_p5 = pnand %p1113_p3, %p1107_p0 }
  0x60   : > { %608 = vperm.xlu0 %1093, %v578_v40  }
  0x63   : > { %613 = vperm.xlu1 %1092, %v579_v43  }
  0x64   : > { %618 = vperm.xlu0 %1093, %v580_v42  }
  0x67   : > { %623 = vperm.xlu1 %1092, %v581_v45  }
  0x68   : > { %628 = vperm.xlu0 %1093, %v582_v44  }
  0x6b   : > { %633 = vperm.xlu1 %1092, %v583_v47  }
  0x6c   : > { %638 = vperm.xlu0 %1093, %v584_v46  }
  0x6f   : > { %643 = vperm.xlu1 %1092, %v585_v48  }
  0x95   : > { %v420_v52 = vpop.permute.xlu1 %419 }
  0x96   : > { %v392_v53 = vpop.permute.xlu0 %391 }
  0x99   : > { %v424_v56 = vpop.permute.xlu1 %423 }
  0x9a   : > { %v465_v57 = vpop.permute.xlu0 %464 }
  0x9d   : > { %v469_v0 = vpop.permute.xlu1 %468 }
  0x9e   : > { %v396_v1 = vpop.permute.xlu0 %395 }
  0xa1   : > { %v422_v2 = vpop.permute.xlu1 %421 }
  0xa2   : > { %v394_v3 = vpop.permute.xlu0 %393  ;;  %v426_v4 = vsel %vm425_vm2, %v420_v52, %v422_v2  ;;  %v427_v5 = vsel %vm425_vm2, %v422_v2, %v424_v56  ;;  %vm646_vm2 = vcmask 220160  }
  0xa3   : > { %v398_v6 = vsel %vm397_vm3, %v392_v53, %v394_v3  ;;  %v399_v7 = vsel %vm397_vm3, %v394_v3, %v396_v1  ;;  %v430_v8 = vsel %vm334_vm4, 0.0, %v426_v4  ;;  %v431_v9 = vsel %vm335_vm5, 0.0, %v427_v5 }
  0xa4   : > { %v402_v10 = vsel %vm386_vm6, 0.0, %v398_v6  ;;  %v403_v11 = vsel %vm387_vm7, 0.0, %v399_v7  ;;  %v434_v12 = vrot.slane %v430_v8, 7  ;;  %v435_v13 = vrot.slane %v431_v9, 7 }
  0xa5   : > { %v406_v14 = vrot.slane %v402_v10, 2  ;;  %v407_v15 = vrot.slane %v403_v11, 2  ;;  %v342_v17 = vpop.permute.xlu1 %341  ;;  %v560_v11 = vld [vmem:[%s1530_s3 + $0x30] sm:$0xff] }
  0xa6   : > { %v467_v16 = vpop.permute.xlu0 %466  ;;  %438 = vst [vmem:[#allocation3 + $0x10] sm:$0xe] %v434_v12  ;;  %439 = vst [vmem:[#allocation3 + $0x18] sm:$0xe] %v435_v13  ;;  %v555_v12 = vld [vmem:[%s1530_s3 + $0x8] sm:$0xff]  ;;  %v561_v13 = vld [vmem:[%s1530_s3 + $0x38] sm:$0xff] }
  0xa7   : > { %410 = vst [vmem:[#allocation3 + $0x10] ss:$-12 sps:$4 sm:$0xc1] %v406_v14   ;;  %411 = vst [vmem:[#allocation3 + $0x18] ss:$-12 sps:$4 sm:$0xc1] %v407_v15   ;;  %v471_v18 = vsel %vm470_vm8, %v465_v57, %v467_v16  ;;  %v472_v19 = vsel %vm470_vm8, %v467_v16, %v469_v0 }
  0xa8   : > { %v475_v20 = vsel %vm386_vm6, 0.0, %v471_v18  ;;  %v476_v21 = vsel %vm387_vm7, 0.0, %v472_v19  ;;  %v556_v14 = vld [vmem:[%s1530_s3 + $0x10] sm:$0xff]  ;;  %v562_v15 = vld [vmem:[%s1530_s3 + $0x40] sm:$0xff]  ;;  %v557_v16 = vld [vmem:[%s1530_s3 + $0x18] sm:$0xff] }
  0xa9   : > { %v479_v22 = vrot.slane %v475_v20, 1  ;;  %v480_v23 = vrot.slane %v476_v21, 1  ;;  %v340_v25 = vpop.permute.xlu1 %339  ;;  %v558_v18 = vld [vmem:[%s1530_s3 + $0x20] sm:$0xff]  ;;  %v564_v19 = vld [vmem:[%s1530_s3 + $0x50] sm:$0xff]  ;;  %v559_v20 = vld [vmem:[%s1530_s3 + $0x28] sm:$0xff] }
  0xaa   : > { %v344_v24 = vpop.permute.xlu0 %343  ;;  %v346_v27 = vsel %vm345_vm9, %v340_v25, %v342_v17  ;;  %v565_v21 = vld [vmem:[%s1530_s3 + $0x58] sm:$0xff] }
  0xab   : > { %483 = vst [vmem:[#allocation3 + $0x20] ss:$-12 sps:$4 sm:$0x83] %v479_v22   ;;  %484 = vst [vmem:[#allocation3 + $0x28] ss:$-12 sps:$4 sm:$0x83] %v480_v23   ;;  %v347_v26 = vsel %vm345_vm9, %v342_v17, %v344_v24 }
  0xac   : > { %v351_v28 = vsel %vm335_vm5, 0.0, %v347_v26  ;;  %v350_v29 = vsel %vm334_vm4, 0.0, %v346_v27  ;;  %v563_v17 = vld [vmem:[%s1530_s3 + $0x48] sm:$0xff] }
  0xad   : > { %353 = vst [vmem:[#allocation3 + $0x8] sm:$0x7] %v351_v28  ;;  %352 = vst [vmem:[#allocation3] sm:$0x7] %v350_v29  ;;  %v367_v31 = vpop.permute.xlu1 %366 }
  0xae   : > { %v365_v30 = vpop.permute.xlu0 %364 }
  0xaf   : > { %v370_v32 = vsel %vm368_vm10, %v365_v30, %v367_v31 }
  0xb0   : > { %374 = vst [vmem:[#allocation3 + $0x8] sm:$0x38] %v370_v32 }
  0xb1   : > { %v451_v34 = vpop.permute.xlu1 %450 }
  0xb2   : > { %v449_v33 = vpop.permute.xlu0 %448 }
  0xb3   : > { %v454_v35 = vsel %vm452_vm11, %v449_v33, %v451_v34 }
  0xb4   : > { %458 = vst [vmem:[#allocation3 + $0x18] sm:$0x70] %v454_v35 }
  0xb5   : > { %v447_v38 = vpop.permute.xlu1 %446 }
  0xb6   : > { %v363_v37 = vpop.permute.xlu0 %362  ;;  %v453_v40 = vsel %vm452_vm11, %v447_v38, %v449_v33 }
  0xb7   : > { %v369_v39 = vsel %vm368_vm10, %v363_v37, %v365_v30  ;;  %457 = vst [vmem:[#allocation3 + $0x10] sm:$0x70] %v453_v40  ;;  %v567_v44 = vld [vmem:[#allocation3 + $0x8] sm:$0xff] }
  0xb8   : > { %373 = vst [vmem:[#allocation3] sm:$0x38] %v369_v39 }
  0xb9   : > { %v497_v42 = vpop.permute.xlu1 %496 }
  0xba   : > { %v495_v41 = vpop.permute.xlu0 %494 }
  0xbb   : > { %v500_v43 = vsel %vm498_vm12, %v495_v41, %v497_v42  ;;  %v569_v45 = vld [vmem:[#allocation3 + $0x18] sm:$0xff] }
  0xbc   : > { %v504_v46 = vsel %vm335_vm5, 0.0, %v500_v43  ;;  %v1007_v47 = vpack.c.bf16 %v569_v45, %v567_v44 }
  0xbd   : > { %v508_v48 = vrot.slane %v504_v46, 6  ;;  %v542_v50 = vpop.permute.xlu1 %541 }
  0xbe   : > { %v493_v49 = vpop.permute.xlu0 %492  ;;  %1008 = vmatprep.subr.bf16.mxu0 %v1007_v47  ;;  %1017 = vmatprep.subr.bf16.mxu1 %v1007_v47  ;;  %v568_v53 = vld [vmem:[#allocation3 + $0x10] sm:$0xff] }
  0xbf   : > { %512 = vst [vmem:[#allocation3 + $0x28] sm:$0x1c] %v508_v48  ;;  %v499_v51 = vsel %vm498_vm12, %v493_v49, %v495_v41  ;;  %v566_v52 = vld [vmem:[#allocation3] sm:$0xff] }
  0xc0   : > { %v503_v54 = vsel %vm334_vm4, 0.0, %v499_v51  ;;  %v1009_v55 = vpack.c.bf16 %v568_v53, %v566_v52 }
  0xc1   : > { %v507_v56 = vrot.slane %v503_v54, 6  ;;  %v524_v58 = vpop.permute.xlu1 %523 }
  0xc2   : > { %v544_v57 = vpop.permute.xlu0 %543  ;;  %1010 = vmatpush1.bf16.msra.mxu0 %v1009_v55  ;;  %1019 = vmatpush1.bf16.msra.mxu1 %v1009_v55 }
  0xc3   : > { %511 = vst [vmem:[#allocation3 + $0x20] sm:$0x1c] %v507_v56  ;;  %v547_v59 = vsel %vm545_vm13, %v542_v50, %v544_v57 }
  0xc4   : > { %v551_v61 = vsel %vm387_vm7, 0.0, %v547_v59 }
  0xc5   : > { %553 = vst [vmem:[#allocation3 + $0x38] sm:$0x7] %v551_v61  ;;  %v540_v1 = vpop.permute.xlu1 %539 }
  0xc6   : > { %v526_v0 = vpop.permute.xlu0 %525  ;;  %v546_v3 = vsel %vm545_vm13, %v540_v1, %v542_v50 }
  0xc7   : > { %v529_v2 = vsel %vm527_vm14, %v524_v58, %v526_v0  ;;  %v550_v60 = vsel %vm386_vm6, 0.0, %v546_v3 }
  0xc8   : > { %533 = vst [vmem:[#allocation3 + $0x28] sm:$0xe0] %v529_v2  ;;  %552 = vst [vmem:[#allocation3 + $0x30] sm:$0x7] %v550_v60 }
  0xca   : > { %v522_v4 = vpop.permute.xlu0 %521 }
  0xcb   : > { %v528_v5 = vsel %vm527_vm14, %v522_v4, %v524_v58 }
  0xcc   : > { %532 = vst [vmem:[#allocation3 + $0x20] sm:$0xe0] %v528_v5  ;;  %v573_v7 = vld [vmem:[#allocation3 + $0x38] sm:$0x7] }
  0xcf   : > { %v571_v6 = vld [vmem:[#allocation3 + $0x28] sm:$0xff]  ;;  %v572_v9 = vld [vmem:[#allocation3 + $0x30] sm:$0x7] }
  0xd0   : > { %v1011_v63 = vpack.c.bf16 %v573_v7, %v571_v6 }
  0xd2   : > { %1013 = vmatprep.subr.msk.bf16.mxu0 %vm1012_vm1, %v1011_v63  ;;  %1018 = vmatprep.subr.msk.bf16.mxu1 %vm1012_vm1, %v1011_v63 }
  0xd3   : > { %v570_v8 = vld [vmem:[#allocation3 + $0x20] sm:$0xff] }
  0xd4   : > { %v1014_v10 = vpack.c.bf16 %v572_v9, %v570_v8 }
  0xd6   : > { %1016 = vmatpush1.bf16.msk.msra.mxu0 %vm1012_vm1, %v1014_v10  ;;  %1020 = vmatpush1.bf16.msk.msra.mxu1 %vm1012_vm1, %v1014_v10  ;;  %v589_v22 = vpop.permute.xlu1 %588 }
  0xd9   : > { %988 = vmatmul.mubr.msk.f32.vlgmr.msra.gmra.mrb[0].mxu0 %vm646_vm2, %v554_v62  ;;  %994 = vmatmul.mubr.msk.f32.vlgmr.msra.gmra.mrb[0].mxu1 %vm646_vm2, %v560_v11 }
  0xda   : > { %760 = vmatprep.mubr.f32.mxu0 %v1194_v36  ;;  %796 = vmatprep.mubr.f32.mxu1 %v1194_v36  ;;  %v599_v23 = vpop.permute.xlu1 %598 }
  0xdb   : > { %v594_v24 = vpop.permute.xlu0 %593 }
  0xdd   : > { %989 = vmatmul.mubr.msk.f32.gmra.mrb[2].mxu0 %vm646_vm2, %v555_v12  ;;  %995 = vmatmul.mubr.msk.f32.gmra.mrb[2].mxu1 %vm646_vm2, %v561_v13 }
  0xde   : > { %766 = vmatprep.mubr.f32.mxu0 %v1194_v36  ;;  %802 = vmatprep.mubr.f32.mxu1 %v1194_v36  ;;  %v604_v25 = vpop.permute.xlu1 %603 }
  0xdf   : > { %v1433_v26 = vpop.permute.xlu0 %608 }
  0xe1   : > { %990 = vmatmul.mubr.msk.f32.gmra.mrb[4].mxu0 %vm646_vm2, %v556_v14  ;;  %996 = vmatmul.mubr.msk.f32.gmra.mrb[4].mxu1 %vm646_vm2, %v562_v15 }
  0xe2   : > { %772 = vmatprep.mubr.f32.mxu0 %v1194_v36  ;;  %808 = vmatprep.mubr.f32.mxu1 %v1194_v36 }
  0xe3   : > { %v619_v27 = vpop.permute.xlu0 %618 }
  0xe5   : > { %991 = vmatmul.mubr.msk.f32.gmra.mrb[6].mxu0 %vm646_vm2, %v557_v16  ;;  %997 = vmatmul.mubr.msk.f32.gmra.mrb[6].mxu1 %vm646_vm2, %v563_v17 }
  0xe6   : > { %778 = vmatprep.mubr.f32.mxu0 %v1194_v36  ;;  %814 = vmatprep.mubr.f32.mxu1 %v1194_v36 }
  0xe7   : > { %v629_v46 = vpop.permute.xlu0 %628 }
  0xe9   : > { %992 = vmatmul.mubr.msk.f32.gmra.mrb[8].mxu0 %vm646_vm2, %v558_v18  ;;  %998 = vmatmul.mubr.msk.f32.gmra.mrb[8].mxu1 %vm646_vm2, %v564_v19 }
  0xea   : > { %784 = vmatprep.mubr.f32.mxu0 %v1194_v36  ;;  %820 = vmatprep.mubr.f32.mxu1 %v1194_v36  ;;  %v1438_v36 = vpop.permute.xlu1 %613 }
  0xeb   : > { %v639_v3 = vpop.permute.xlu0 %638 }
  0xed   : > { %993 = vmatmul.mubr.msk.f32.gmra.mrb[10].mxu0 %vm646_vm2, %v559_v20  ;;  %999 = vmatmul.mubr.msk.f32.gmra.mrb[10].mxu1 %vm646_vm2, %v565_v21 }
  0xee   : > { %v624_v37 = vpop.permute.xlu1 %623 }
  0xf2   : > { %v634_v55 = vpop.permute.xlu1 %633 }
  0xf6   : > { %v644_v10 = vpop.permute.xlu1 %643 }
 0x1ac   : > { %v756_v28 = vpop.f32.mrb[0].mxu0  ;;  %v792_v29 = vpop.f32.mrb[0].mxu1 }
 0x1ad   : > { %v757_v30 = vadd.f32 %v756_v28, %v589_v22  ;;  %v793_v31 = vadd.f32 %v792_v29, %v619_v27  ;;  %v758_v32 = vpop.f32.mrb[1].mxu0  ;;  %v794_v33 = vpop.f32.mrb[1].mxu1 }
 0x1ae   : > { %v759_v34 = vadd.f32 %v758_v32, %v589_v22  ;;  %v795_v35 = vadd.f32 %v794_v33, %v619_v27 }
 0x1af   : > { %827 = vst [vmem:[%s1440_s17] sm:$0xff] %v757_v30  ;;  %839 = vst [vmem:[%s1440_s17 + $0x60] sm:$0xff] %v793_v31 }
 0x1b0   : > { %828 = vst [vmem:[%s1440_s17 + $0x8] sm:$0xff] %v759_v34  ;;  %840 = vst [vmem:[%s1440_s17 + $0x68] sm:$0xff] %v795_v35  ;;  %v762_v38 = vpop.f32.mrb[2].mxu0  ;;  %v798_v39 = vpop.f32.mrb[2].mxu1 }
 0x1b1   : > { %v763_v40 = vadd.f32 %v762_v38, %v594_v24  ;;  %v799_v41 = vadd.f32 %v798_v39, %v624_v37  ;;  %v764_v42 = vpop.f32.mrb[3].mxu0  ;;  %v800_v43 = vpop.f32.mrb[3].mxu1 }
 0x1b2   : > { %v765_v44 = vadd.f32 %v764_v42, %v594_v24  ;;  %v801_v45 = vadd.f32 %v800_v43, %v624_v37 }
 0x1b3   : > { %829 = vst [vmem:[%s1440_s17 + $0x10] sm:$0xff] %v763_v40  ;;  %841 = vst [vmem:[%s1440_s17 + $0x70] sm:$0xff] %v799_v41 }
 0x1b4   : > { %830 = vst [vmem:[%s1440_s17 + $0x18] sm:$0xff] %v765_v44  ;;  %842 = vst [vmem:[%s1440_s17 + $0x78] sm:$0xff] %v801_v45  ;;  %v768_v47 = vpop.f32.mrb[4].mxu0  ;;  %v804_v48 = vpop.f32.mrb[4].mxu1 }
 0x1b5   : > { %v769_v49 = vadd.f32 %v768_v47, %v599_v23  ;;  %v805_v50 = vadd.f32 %v804_v48, %v629_v46  ;;  %v770_v51 = vpop.f32.mrb[5].mxu0  ;;  %v806_v52 = vpop.f32.mrb[5].mxu1 }
 0x1b6   : > { %v771_v53 = vadd.f32 %v770_v51, %v599_v23  ;;  %v807_v54 = vadd.f32 %v806_v52, %v629_v46 }
 0x1b7   : > { %831 = vst [vmem:[%s1440_s17 + $0x20] sm:$0xff] %v769_v49  ;;  %843 = vst [vmem:[%s1440_s17 + $0x80] sm:$0xff] %v805_v50 }
 0x1b8   : > { %832 = vst [vmem:[%s1440_s17 + $0x28] sm:$0xff] %v771_v53  ;;  %844 = vst [vmem:[%s1440_s17 + $0x88] sm:$0xff] %v807_v54  ;;  %v774_v56 = vpop.f32.mrb[6].mxu0  ;;  %v810_v57 = vpop.f32.mrb[6].mxu1 }
 0x1b9   : > { %v775_v58 = vadd.f32 %v774_v56, %v604_v25  ;;  %v811_v59 = vadd.f32 %v810_v57, %v634_v55  ;;  %v776_v61 = vpop.f32.mrb[7].mxu0  ;;  %v812_v0 = vpop.f32.mrb[7].mxu1 }
 0x1ba   : > { %v777_v1 = vadd.f32 %v776_v61, %v604_v25  ;;  %v813_v2 = vadd.f32 %v812_v0, %v634_v55 }
 0x1bb   : > { %833 = vst [vmem:[%s1440_s17 + $0x30] sm:$0xff] %v775_v58  ;;  %845 = vst [vmem:[%s1440_s17 + $0x90] sm:$0xff] %v811_v59 }
 0x1bc   : > { %834 = vst [vmem:[%s1440_s17 + $0x38] sm:$0xff] %v777_v1  ;;  %846 = vst [vmem:[%s1440_s17 + $0x98] sm:$0xff] %v813_v2  ;;  %v780_v60 = vpop.f32.mrb[8].mxu0  ;;  %v816_v4 = vpop.f32.mrb[8].mxu1 }
 0x1bd   : > { %v781_v5 = vadd.f32 %v780_v60, %v1433_v26  ;;  %v817_v6 = vadd.f32 %v816_v4, %v639_v3  ;;  %v782_v7 = vpop.f32.mrb[9].mxu0  ;;  %v818_v63 = vpop.f32.mrb[9].mxu1 }
 0x1be   : > { %v783_v8 = vadd.f32 %v782_v7, %v1433_v26  ;;  %v819_v9 = vadd.f32 %v818_v63, %v639_v3 }
 0x1bf   : > { %835 = vst [vmem:[%s1440_s17 + $0x40] sm:$0xff] %v781_v5  ;;  %847 = vst [vmem:[%s1440_s17 + $0xa0] sm:$0xff] %v817_v6 }
 0x1c0   : > { %836 = vst [vmem:[%s1440_s17 + $0x48] sm:$0xff] %v783_v8  ;;  %848 = vst [vmem:[%s1440_s17 + $0xa8] sm:$0xff] %v819_v9  ;;  %v786_v62 = vpop.f32.mrb[10].mxu0  ;;  %v822_v11 = vpop.f32.mrb[10].mxu1 }
 0x1c1   : > { %v787_v12 = vadd.f32 %v786_v62, %v1438_v36  ;;  %v823_v13 = vadd.f32 %v822_v11, %v644_v10  ;;  %v788_v14 = vpop.f32.mrb[11].mxu0  ;;  %v824_v15 = vpop.f32.mrb[11].mxu1 }
 0x1c2   : > { %v789_v16 = vadd.f32 %v788_v14, %v1438_v36  ;;  %v825_v17 = vadd.f32 %v824_v15, %v644_v10 }
 0x1c3   : > { %837 = vst [vmem:[%s1440_s17 + $0x50] sm:$0xff] %v787_v12  ;;  %849 = vst [vmem:[%s1440_s17 + $0xb0] sm:$0xff] %v823_v13 }
 0x1c4   : > { %838 = vst [vmem:[%s1440_s17 + $0x58] sm:$0xff] %v789_v16  ;;  %850 = vst [vmem:[%s1440_s17 + $0xb8] sm:$0xff] %v825_v17 }
 0x1c5   : > { %1117 = shalt.err (!%p1114_p5)
}
 0x1c6   : > { %s1118_s12 = scalar_lea.hbm %s1470_s29, 3072  ;;  %s1122_s15 = scalar_lea.hbm %s1532_s5, 6144 }
 0x1c7   : > { %p1119_p6 = scmp.ne.s32.totalorder %s1470_s29, %s1118_s12  ;;  %p1123_p10 = scmp.lt.u32.totalorder %s1470_s29, %s1532_s5 }
 0x1c8   : > { %p1124_p11 = scmp.lt.u32.totalorder %s1122_s15, %s1118_s12  ;;  %p1126_p13 = scmp.lt.u32.totalorder %s1118_s12, %s1470_s29 }
 0x1c9   : > { %p1120_p7 = pnand %p1119_p6, %p1269_p4 }
 0x1ca   : > { %p1125_p12 = por %p1124_p11, %p1123_p10 }
 0x1cb   : > { %p1121_p9 = pneg %p1120_p7 }
 0x1cc   : > { %p1127_p0 = por %p1126_p13, %p1125_p12 }
 0x1ce   : > { %p1128_p1 = pnand %p1127_p0, %p1121_p9 }
 0x1d0   : > { %1131 = shalt.err (!%p1128_p1)
}
 0x1d1   : > { %s1197_s24 = smov 256   ;;  %s1198_s21 = smov 16  }
 0x1d2   : > { %1023 = dma.vmem_to_hbm [thread:$0]  (%p1269_p4), %s1472_s25, 3072, %s1470_s29, %s1481_s7, %s1197_s24, %s1197_s24, %s1198_s21  }
 0x1d3 PF: > { %p1029_p2 = scmp.ge.s32.totalorder %s1182_s23, 2  ;;  %s882_s27 = sand.u32 1, %s1162_s18  }
 0x1d4   : > { %s883_s8 = scalar_lea.sflag [#allocation5], %s882_s27 }
 0x1d5   : > { %p1026_p3 = pnand %p1029_p2, %p1276_p8 }
 0x1d7   : > { %1157 = dma.done.wait (!%p1026_p3), %s883_s8, 3072  }
 0x1d8   : > { %1159 = vsyncadd (!%p1026_p3), %s883_s8, 4294964224  ;;  %s18_s23 = sadd.s32 1, %s1182_s23   ;;  %s1535_s18 = smov %s1166_s19 }
 0x1d9   : > { %p15_p5 = scmp.ge.s32.totalorder %s18_s23, 4   ;;  %s1536_s19 = smov %s1170_s20 }
 0x1da   : > { %s1537_s20 = smov %s1282_s6  ;;  %s1538_s21 = smov %s1178_s22 }
 0x1db   : > { %s1539_s22 = smov %s1541_s26  ;;  %17 = sbr.rel (!%p15_p5) target bundleno = 4 (0x4), region = 81 }
 0x1e2   :  { %888 = vsyncpa [#allocation5], 1 }
 0x1e3   :  { %890 = vsyncpa [#allocation5 + $0x1], 1 }

</bundles_post_ra>
